<compile_context>
chip_gen: v5e
topology: v5e:2x2
jax: 0.10.0
libtpu: 0.0.40
codegen_flags: <defaults>
</compile_context>

<pallas_src>
import math

import numpy as np
import jax
import jax.numpy as jnp
from jax.experimental import pallas as pl
from jax.experimental.pallas import tpu as pltpu


def _round_up(x, m):
    return (x + m - 1) // m * m


def _cdiv(a, b):
    return -(-a // b)


def _vmem_capacity_bytes():
    """Physical per-core VMEM; conservative v7x value if the query fails."""
    try:
        return int(pltpu.get_tpu_info().vmem_capacity_bytes)
    except Exception:
        return 64 * 1024 * 1024


# ---------------------------------------------------------------------------
# Pallas kernel: tiled GEMM + bias, f32 accumulation, optional K reduction.
# ---------------------------------------------------------------------------
def _matmul_bias_kernel(p_ref, w_ref, b_ref, o_ref, acc_ref):
    # p_ref:   (TM, TK)   bf16 im2col patch tile (streamed over M and K)
    # w_ref:   (TK, OCp)  bf16 reshaped conv weight tile (resident when n_k==1)
    # b_ref:   (1, OCp)   f32 bias (resident)
    # o_ref:   (TM, OCp)  f32 lane-dense output tile
    # acc_ref: (TM, OCp)  f32 VMEM accumulator, persists across the K axis
    k = pl.program_id(1)

    @pl.when(k == 0)
    def _():
        acc_ref[...] = jnp.zeros_like(acc_ref)

    acc_ref[...] += jnp.dot(p_ref[...], w_ref[...],
                            preferred_element_type=jnp.float32)

    @pl.when(k == pl.num_programs(1) - 1)
    def _():
        o_ref[...] = (acc_ref[...] + b_ref[...].astype(jnp.float32)
                      ).astype(o_ref.dtype)


def prepare_conv_unit_params(weight, bias, compute_dtype=jnp.bfloat16):
    """Hoistable per-parameter-set prep: (OC,C,KH,KW) -> (K,OC) bf16, bias f32."""
    OC, C, KH, KW = weight.shape
    w2 = weight.reshape(OC, C * KH * KW).T.astype(compute_dtype)  # (K, OC)
    b2 = bias.astype(jnp.float32).reshape(1, OC)
    return w2, b2


def conv_unit_forward(x, weight, bias, *, stride=2, compute_dtype=jnp.bfloat16,
                      tm_max=512, k_split_threshold=8192):
    """Forward of ConvUnit: Conv2d(in_channels, 32, kernel_size=9, stride=2, bias=True).

    x:      (N, C, H, W)   float32 (NCHW, like PyTorch)
    weight: (OC, C, KH, KW) float32
    bias:   (OC,)           float32
    returns (N, OC, OH, OW) float32 with OH=(H-KH)//stride+1, OW=(W-KW)//stride+1
    """
    N, C, H, W = x.shape
    OC, _, KH, KW = weight.shape
    OH = (H - KH) // stride + 1
    OW = (W - KW) // stride + 1

    w2, b2 = prepare_conv_unit_params(weight, bias, compute_dtype)

    # ---- im2col (glue, plain JAX), emitted directly in the MXU compute dtype.
    # K-axis ordering is (C, KH, KW), matching weight.reshape(OC, C*KH*KW).
    # TODO(synk): fuse patch extraction into the kernel (manual DMA of a 9-row
    # input band per output-row tile) to remove this HBM intermediate entirely.
    xc = x.astype(compute_dtype)
    cols = []
    for kh in range(KH):
        for kw in range(KW):
            cols.append(
                xc[:, :, kh:kh + stride * OH:stride, kw:kw + stride * OW:stride])
    patches = jnp.stack(cols, axis=2)             # (N, C, KH*KW, OH, OW)
    patches = patches.transpose(0, 3, 4, 1, 2)    # (N, OH, OW, C, KH*KW)
    patches = patches.reshape(N * OH * OW, C * KH * KW)

    M, K = patches.shape
    itemsize = np.dtype(compute_dtype).itemsize
    OCp = _round_up(max(OC, 128), 128)            # lane-dense output (unmasked vst)

    # ---- K tiling: keep contraction unsplit (and unpadded: a block dim equal
    # to the full array extent is legal) unless K is large; then split into
    # 128-aligned chunks and accumulate over a reduction grid axis.
    if K <= k_split_threshold:
        n_k, TK, Kp = 1, K, K
    else:
        n_k = _cdiv(K, k_split_threshold)
        TK = _round_up(_cdiv(K, n_k), 128)
        Kp = n_k * TK

    # ---- VMEM budget (generation-aware: ~128 MiB on v5e/v6e, 64 MiB on v7x).
    vmem_cap = _vmem_capacity_bytes()
    vmem_limit = int(min(vmem_cap * 3 // 4, 96 * 1024 * 1024))
    # Fixed residency: double-buffered weight tile + bias, plus headroom.
    fixed = 2 * TK * OCp * itemsize + 2 * OCp * 4
    budget = max(vmem_limit - fixed - (4 << 20), 1 << 20)
    # Per-M-row pipeline cost: 2 patch buffers + 2 output buffers + accumulator.
    bytes_per_row = 2 * TK * itemsize + 2 * OCp * 4 + OCp * 4
    tm_cap = max(16, budget // bytes_per_row // 16 * 16)

    # ---- M tile: multiple of 16 (bf16 sublane packing); keep >= 2 tiles so
    # the "parallel" M axis can shard across v7x's two TensorCores.
    if M >= 32:
        two_tiles = _round_up(_cdiv(M, 2), 16)
        TM = min(tm_max, tm_cap, two_tiles)
    else:
        TM = min(tm_max, tm_cap, _round_up(M, 16))
    M_pad = _round_up(M, TM)

    # ---- padding (conditional; zero rows/cols contribute nothing and are
    # sliced off afterwards).
    if M_pad != M or Kp != K:
        patches = jnp.pad(patches, ((0, M_pad - M), (0, Kp - K)))
    wkp = w2
    if Kp != K:
        wkp = jnp.pad(wkp, ((0, Kp - K), (0, 0)))
    if OCp != OC:
        wkp = jnp.pad(wkp, ((0, 0), (0, OCp - OC)))
        bp = jnp.pad(b2, ((0, 0), (0, OCp - OC)))
    else:
        bp = b2

    grid = (M_pad // TM, n_k)

    out = pl.pallas_call(
        _matmul_bias_kernel,
        out_shape=jax.ShapeDtypeStruct((M_pad, OCp), jnp.float32),
        grid=grid,
        in_specs=[
            pl.BlockSpec((TM, TK), lambda i, k: (i, k)),    # streamed patch tiles
            pl.BlockSpec((TK, OCp), lambda i, k: (k, 0)),   # weight (resident if n_k==1)
            pl.BlockSpec((1, OCp), lambda i, k: (0, 0)),    # resident bias
        ],
        out_specs=pl.BlockSpec((TM, OCp), lambda i, k: (i, 0)),
        scratch_shapes=[pltpu.VMEM((TM, OCp), jnp.float32)],
        compiler_params=pltpu.CompilerParams(
            dimension_semantics=("parallel", "arbitrary"),
            vmem_limit_bytes=vmem_limit,
        ),
    )(patches, wkp, bp)

    # strip padding, back to NCHW
    out = out[:M, :OC].reshape(N, OH, OW, OC).transpose(0, 3, 1, 2)
    return out


def init_conv_unit_params(key, in_channels, out_channels=32, ksize=9):
    """Deterministic init mimicking nn.Conv2d default (kaiming-uniform-ish bounds)."""
    kw_key, kb_key = jax.random.split(key)
    fan_in = in_channels * ksize * ksize
    bound = 1.0 / math.sqrt(fan_in)
    weight = jax.random.uniform(
        kw_key, (out_channels, in_channels, ksize, ksize),
        minval=-bound, maxval=bound, dtype=jnp.float32)
    bias = jax.random.uniform(
        kb_key, (out_channels,), minval=-bound, maxval=bound, dtype=jnp.float32)
    return weight, bias


if __name__ == "__main__":
    key = jax.random.PRNGKey(0)
    x_key, p_key = jax.random.split(key)

    # small, shape-consistent inputs: batch=2, in_channels=4, spatial=16
    N, C, H, W = 2, 4, 16, 16
    x = jax.random.normal(x_key, (N, C, H, W), dtype=jnp.float32)

    weight, bias = init_conv_unit_params(p_key, in_channels=C)

    out = conv_unit_forward(x, weight, bias, stride=2)
    out = jax.block_until_ready(out)

    # Reference using the same bf16 operand rounding (f32 accumulation) that the
    # kernel's MXU path uses, so tolerances stay tight.
    ref = jax.lax.conv_general_dilated(
        x.astype(jnp.bfloat16), weight.astype(jnp.bfloat16),
        window_strides=(2, 2), padding="VALID",
        dimension_numbers=("NCHW", "OIHW", "NCHW"),
        preferred_element_type=jnp.float32,
    ) + bias[None, :, None, None]

    assert out.shape == (N, 32, 4, 4), out.shape
    assert jnp.allclose(out, ref, atol=1e-2, rtol=1e-2), float(
        jnp.max(jnp.abs(out - ref)))

    print("KERNEL_OK")
</pallas_src>

<mosaic_0001>
module attributes {stable_mosaic.version = 11 : i64} {
  func.func @_matmul_bias_kernel(%arg0: i32, %arg1: i32, %arg2: memref<16x324xbf16, #tpu.memory_space<vmem>>, %arg3: memref<324x128xbf16, #tpu.memory_space<vmem>>, %arg4: memref<1x128xf32, #tpu.memory_space<vmem>>, %arg5: memref<16x128xf32, #tpu.memory_space<vmem>>, %arg6: memref<16x128xf32, #tpu.memory_space<vmem>>) attributes {dimension_semantics = [#tpu.dimension_semantics<parallel>, #tpu.dimension_semantics<arbitrary>], iteration_bounds = array<i64: 2, 1>, scalar_prefetch = 0 : i64, scratch_operands = 1 : i64, tpu.core_type = #tpu.core_type<tc>, window_params = [{transform_indices = @transform_0, window_bounds = array<i64: 16, 324>}, {transform_indices = @transform_1, window_bounds = array<i64: 324, 128>}, {pipeline_mode = #tpu.pipeline_mode<synchronous>, transform_indices = @transform_2, window_bounds = array<i64: 1, 128>}, {transform_indices = @transform_3, window_bounds = array<i64: 16, 128>}]} {
    %c0_i32 = arith.constant 0 : i32
    %0 = arith.cmpi eq, %arg1, %c0_i32 : i32
    %1 = arith.extui %0 : i1 to i32
    %c0_i32_0 = arith.constant 0 : i32
    %2 = arith.cmpi ne, %1, %c0_i32_0 : i32
    scf.if %2 {
      %cst_10 = arith.constant 0.000000e+00 : f32
      %12 = vector.broadcast %cst_10 : f32 to vector<16x128xf32>
      %c0_11 = arith.constant 0 : index
      %c0_12 = arith.constant 0 : index
      %13 = vector.load %arg6[%c0_11, %c0_12] : memref<16x128xf32, #tpu.memory_space<vmem>>, vector<16x128xf32>
      tpu.vector_store %arg6[%c0_11, %c0_12], %12 {strides = array<i32>} : memref<16x128xf32, #tpu.memory_space<vmem>>, vector<16x128xf32>,
    } else {
    }
    %c0 = arith.constant 0 : index
    %c0_1 = arith.constant 0 : index
    %3 = vector.load %arg6[%c0, %c0_1] : memref<16x128xf32, #tpu.memory_space<vmem>>, vector<16x128xf32>
    %c0_2 = arith.constant 0 : index
    %c0_3 = arith.constant 0 : index
    %4 = vector.load %arg2[%c0_2, %c0_3] : memref<16x324xbf16, #tpu.memory_space<vmem>>, vector<16x324xbf16>
    %c0_4 = arith.constant 0 : index
    %c0_5 = arith.constant 0 : index
    %5 = vector.load %arg3[%c0_4, %c0_5] : memref<324x128xbf16, #tpu.memory_space<vmem>>, vector<324x128xbf16>
    %cst = arith.constant dense<0.000000e+00> : vector<16x128xf32>
    %6 = tpu.matmul %4, %5, %cst {dimension_numbers = #tpu.dot_dimension_numbers<[1], [0], [0], [1], [0, 0, 1, 1], [], []>} : vector<16x324xbf16>, vector<324x128xbf16>, vector<16x128xf32> -> vector<16x128xf32>
    %7 = arith.addf %3, %6 : vector<16x128xf32>
    %c0_6 = arith.constant 0 : index
    %c0_7 = arith.constant 0 : index
    %8 = vector.load %arg6[%c0_6, %c0_7] : memref<16x128xf32, #tpu.memory_space<vmem>>, vector<16x128xf32>
    tpu.vector_store %arg6[%c0_6, %c0_7], %7 {strides = array<i32>} : memref<16x128xf32, #tpu.memory_space<vmem>>, vector<16x128xf32>,
    %c0_i32_8 = arith.constant 0 : i32
    %9 = arith.cmpi eq, %arg1, %c0_i32_8 : i32
    %10 = arith.extui %9 : i1 to i32
    %c0_i32_9 = arith.constant 0 : i32
    %11 = arith.cmpi ne, %10, %c0_i32_9 : i32
    scf.if %11 {
      %c0_10 = arith.constant 0 : index
      %c0_11 = arith.constant 0 : index
      %12 = vector.load %arg6[%c0_10, %c0_11] : memref<16x128xf32, #tpu.memory_space<vmem>>, vector<16x128xf32>
      %c0_12 = arith.constant 0 : index
      %c0_13 = arith.constant 0 : index
      %13 = vector.load %arg4[%c0_12, %c0_13] : memref<1x128xf32, #tpu.memory_space<vmem>>, vector<1x128xf32>
      %14 = vector.broadcast %13 : vector<1x128xf32> to vector<16x128xf32>
      %15 = arith.addf %12, %14 : vector<16x128xf32>
      %c0_14 = arith.constant 0 : index
      %c0_15 = arith.constant 0 : index
      %16 = vector.load %arg5[%c0_14, %c0_15] : memref<16x128xf32, #tpu.memory_space<vmem>>, vector<16x128xf32>
      tpu.vector_store %arg5[%c0_14, %c0_15], %15 {strides = array<i32>} : memref<16x128xf32, #tpu.memory_space<vmem>>, vector<16x128xf32>,
    } else {
    }
    return
  }
  func.func @transform_0(%arg0: i32, %arg1: i32) -> (i32, i32) {
    %c0_i32 = arith.constant 0 : i32
    return %arg0, %arg1 : i32, i32
  }
  func.func @transform_1(%arg0: i32, %arg1: i32) -> (i32, i32) {
    %c0_i32 = arith.constant 0 : i32
    %c0_i32_0 = arith.constant 0 : i32
    return %arg1, %c0_i32 : i32, i32
  }
  func.func @transform_2(%arg0: i32, %arg1: i32) -> (i32, i32) {
    %c0_i32 = arith.constant 0 : i32
    %c0_i32_0 = arith.constant 0 : i32
    %c0_i32_1 = arith.constant 0 : i32
    return %c0_i32, %c0_i32_0 : i32, i32
  }
  func.func @transform_3(%arg0: i32, %arg1: i32) -> (i32, i32) {
    %c0_i32 = arith.constant 0 : i32
    %c0_i32_0 = arith.constant 0 : i32
    return %arg0, %c0_i32 : i32, i32
  }
}

</mosaic_0001>

<bundles_post_ra>
// kernel: tpu_custom_call.1
= control target key start
LH: loop header
LB: loop body
LE: loop exit
PB: predicated region body
PF: predicated region fallthrough
CT: control target
= control target key end

     0   :  { %8 = vsyncpa [#allocation4], 0  ;;  %s1154_s0 = inlined_call_operand.hbm [shape: bf16[32,324], index: 0, kind: input, shape index: {}]   ;;  %s1155_s1 = inlined_call_operand.hbm [shape: bf16[324,128], index: 1, kind: input, shape index: {}]   ;;  %s1156_s2 = inlined_call_operand.vmem [shape: f32[1,128], index: 2, kind: input, shape index: {}]   ;;  %s1157_s3 = inlined_call_operand.hbm [shape: f32[32,128], index: 3, kind: output, shape index: {}]  }
   0x1   :  { %10 = vsyncpa [#allocation4 + $0x1], 0 }
   0x2   :  { %11 = vsyncpa [#allocation7], 0 }
   0x3   :  { %12 = vsyncpa [#allocation5], 0 }
   0x4   :  { %14 = vsyncpa [#allocation5 + $0x1], 0  ;;  %s999_s12 = smov 0   ;;  %s1001_s13 = smov 0  }
   0x5   :  { %s1003_s14 = smov 0   ;;  %s1005_s15 = smov 0  }
   0x6   :  { %s1007_s16 = smov 0   ;;  %s1009_s17 = smov 0  }
   0x7 LB: > { %s608_s18 = sadd.s32 4294967295, %s970_s17   ;;  %s609_s19 = sadd.s32 4294967294, %s970_s17   ;;  %s970_s17 = sphi %s1009_s17, %s20_s17   ;;  %s966_s16 = sphi %s1007_s16, %s1168_s16   ;;  %s962_s15 = sphi %s1005_s15, %s1167_s15   ;;  %s958_s14 = sphi %s1003_s14, %s1166_s14   ;;  %s954_s13 = sphi %s1001_s13, %s1165_s13   ;;  %s950_s12 = sphi %s999_s12, %s1164_s12  }
   0x8   : > { %p54_p0 = scmp.ne.s32.totalorder %s954_s13, %s950_s12  ;;  %p1033_p1 = scmp.eq.s32.totalorder %s608_s18, 0 }
   0x9   : > { %p1037_p2 = scmp.eq.s32.totalorder %s608_s18, 1  ;;  %p131_p3 = scmp.eq.s32.totalorder %s609_s19, 1 }
   0xa   : > { %p1043_p4 = por %p1033_p1, %p54_p0  ;;  %p610_p5 = scmp.ge.s32.totalorder %s970_s17, 1 }
   0xb   : > { %p1048_p6 = por %p131_p3, %p54_p0  ;;  %p138_p7 = scmp.lt.s32.totalorder %s970_s17, 3 }
   0xc   : > { %s152_s26 = sshll.u32 %s1155_s1, 4  ;;  %s972_s28 = smov [#allocation6]   ;;  %s153_s26 = int_to_ptr.hbm [resolvable:$true] %s152_s26 }
   0xd   : > { %p1056_p8 = pnand %p610_p5, %p138_p7  ;;  %s154_s29 = sshll.u32 %s972_s28, 4  ;;  %s155_s29 = int_to_ptr.vmem [resolvable:$true] %s154_s29 }
   0xe   : > { %p612_p11 = scmp.ge.s32.totalorder %s970_s17, 2  ;;  %s973_s30 = smov 64  }
   0xf   : > { %p752_p9 = pneg %p1056_p8  ;;  %s974_s4 = smov 4  }
  0x10   : > { %s32_s5 = sadd.s32 1, %s966_s16  ;;  %s41_s6 = sadd.s32 1, %s958_s14 }
  0x11   : > { %p753_p10 = pnand %p752_p9, %p1033_p1  ;;  %p34_p12 = scmp.ge.s32.totalorder %s32_s5, 2 }
  0x12   : > { %p48_p13 = scmp.ne.s32.totalorder %s958_s14, %s954_s13  ;;  %p49_p0 = scmp.eq.s32.totalorder %s970_s17, 0 }
  0x13   : > { %755 = dma.hbm_to_vmem [thread:$0]  (!%p753_p10), %s153_s26, 2624, %s155_s29, [#allocation7], %s973_s30, %s973_s30, %s974_s4  }
  0x14   : > { %s1170_s5 = smov (%p34_p12, %s32_s5), 0  ;;  %p50_p3 = por %p49_p0, %p48_p13 }
  0x15   : > { %p1074_p5 = por %p1037_p2, %p48_p13  ;;  %s36_s8 = ssub.s32 %s966_s16, %s1170_s5 }
  0x16   : > { %p765_p7 = scmp.lt.s32.totalorder %s970_s17, 2  ;;  %p39_p9 = scmp.eq.s32.totalorder %s36_s8, 0 }
  0x17   : > { %s171_s9 = sand.u32 1, %s958_s14   ;;  %s742_s18 = smul.u32 24, %s966_s16 }
  0x18   : > { %s741_s10 = smul.u32 24, %s171_s9  ;;  %p757_p10 = pnand %p765_p7, %p50_p3 }
  0x19   : > { %s1083_s11 = scalar_select %p39_p9, %s958_s14, %s41_s6  }
  0x1a   : > { %s175_s19 = scalar_lea.vmem [#allocation3], %s741_s10  ;;  %s183_s28 = scalar_lea.hbm %s1154_s0, %s742_s18 }
  0x1b   : > { %s186_s24 = sshll.u32 %s175_s19, 4  ;;  %s184_s21 = sshll.u32 %s183_s28, 4  ;;  %s187_s24 = int_to_ptr.vmem [resolvable:$true] %s186_s24  ;;  %s185_s21 = int_to_ptr.hbm [resolvable:$true] %s184_s21 }
  0x1c   : > { %s172_s29 = scalar_lea.sflag [#allocation4], %s171_s9  ;;  %s975_s30 = smov 192  }
  0x1d   : > { %s976_s4 = smov 12   ;;  %198 = sbr.rel (%p1056_p8) target bundleno = 215 (0xd7), region = 32 }
  0x1e   : > { %759 = dma.hbm_to_vmem [thread:$0]  (!%p757_p10), %s185_s21, 384, %s187_s24, %s172_s29, %s975_s30, %s975_s30, %s976_s4  }
  0x1f   : > { %s1092_s6 = sand.u32 (!%p1056_p8), 1, %s954_s13  }
  0x20   : > { %s743_s8 = smul.u32 (!%p1056_p8), 24, %s1092_s6  ;;  %s201_s10 = scalar_lea.sflag (!%p1056_p8), [#allocation4], %s1092_s6 }
  0x22   : > { %s1096_s19 = scalar_lea.vmem [#allocation3], %s743_s8 }
  0x23   : > { %937 = dma.done.wait (%p1043_p4), %s201_s10, 384  }
  0x24   : > { %939 = vsyncadd (%p1043_p4), %s201_s10, 4294966912 }
  0x25   : > { %941 = dma.done.wait (%p1033_p1), [#allocation7], 2624  }
  0x26   : > { %943 = vsyncadd (%p1033_p1), [#allocation7], 4294964672  ;;  %v727_v0 = vld [vmem:[#allocation6 + $0x38] sm:$0xff]  ;;  %v290_v2 = vld [vmem:[#allocation6 + $0xa0] sm:$0x3]  ;;  %vm433_vm0 = vcmask 1041408  }
  0x27   : > { %v735_v1 = vld [vmem:[#allocation6 + $0x78] sm:$0xff]  ;;  %v387_v3 = vunpack.c.l.b16 %v290_v2  ;;  %437 = vmatpush.bf16.msra.mxu0 %v727_v0  ;;  %v726_v4 = vld [vmem:[#allocation6 + $0x30] sm:$0xff]  ;;  %v725_v9 = vld [vmem:[#allocation6 + $0x28] sm:$0xff]  ;;  %vm429_vm1 = vcmask 556032   ;;  %s618_s20 = sshll.u32 %s1092_s6, 4  ;;  %s740_s9 = sshll.u32 %s962_s15, 4 }
  0x28   : > { %451 = vmatpush.bf16.msra.mxu1 %v735_v1  ;;  %v734_v6 = vld [vmem:[#allocation6 + $0x70] sm:$0xff]  ;;  %v739_v8 = vld [vmem:[#allocation6 + $0x98] sm:$0xff]  ;;  %v733_v10 = vld [vmem:[#allocation6 + $0x68] sm:$0xff]  ;;  %s508_s25 = scalar_lea.hbm %s1157_s3, %s740_s9  ;;  %s232_s26 = scalar_lea.vmem [#allocation8], %s618_s20 }
  0x29   : > { %v408_v5 = vpack.c.b16 %v387_v3, %v387_v3  ;;  %v738_v11 = vld [vmem:[#allocation6 + $0x90] sm:$0xff]  ;;  %v724_v12 = vld [vmem:[#allocation6 + $0x20] sm:$0xff]  ;;  %v737_v14 = vld [vmem:[#allocation6 + $0x88] sm:$0xff]  ;;  %s509_s28 = sshll.u32 %s232_s26, 4  ;;  %s511_s21 = sshll.u32 %s508_s25, 4  ;;  %s510_s28 = int_to_ptr.vmem [resolvable:$true] %s509_s28  ;;  %s512_s21 = int_to_ptr.hbm [resolvable:$true] %s511_s21 }
  0x2a   : > { %v732_v13 = vld [vmem:[#allocation6 + $0x60] sm:$0xff]  ;;  %v723_v15 = vld [vmem:[#allocation6 + $0x18] sm:$0xff]  ;;  %v722_v18 = vld [vmem:[#allocation6 + $0x10] sm:$0xff]  ;;  %s497_s15 = scalar_lea.sflag [#allocation5], %s1092_s6  ;;  %s898_s29 = sshra.s32 %s512_s21, 4  ;;  %s899_s29 = int_to_ptr.hbm [resolvable:$true] %s898_s29 }
  0x2b   : > { %v435_v7 = vsel %vm433_vm0, %v408_v5, 0  ;;  %438 = vmatpush.bf16.msra.mxu0 %v726_v4  ;;  %v731_v16 = vld [vmem:[#allocation6 + $0x58] sm:$0xff]  ;;  %v736_v17 = vld [vmem:[#allocation6 + $0x80] sm:$0xff]  ;;  %v730_v21 = vld [vmem:[#allocation6 + $0x50] sm:$0xff]  ;;  %s900_s30 = scalar_lea.hbm %s899_s29, 16  ;;  %s904_s10 = scalar_lea.hbm %s1157_s3, 32 }
  0x2c   : > { %468 = vmatpush.bf16.msra.mxu2 %v435_v7  ;;  %452 = vmatpush.bf16.msra.mxu1 %v734_v6  ;;  %v629_v19 = vld [vmem:[%s1096_s19 + $0x8] sm:$0xf]  ;;  %v719_v20 = vld [vmem:[%s1096_s19 + $0x10] sm:$0xf0]  ;;  %v721_v23 = vld [vmem:[#allocation6 + $0x8] sm:$0xff]  ;;  %p901_p1 = scmp.ne.s32.totalorder %s899_s29, %s900_s30  ;;  %p905_p8 = scmp.lt.s32.totalorder %s899_s29, %s1157_s3 }
  0x2d   : > { %v630_v22 = vor.u32 %v719_v20, %v629_v19  ;;  %v729_v24 = vld [vmem:[#allocation6 + $0x48] sm:$0xff]  ;;  %v720_v25 = vld [vmem:[#allocation6] sm:$0xff]  ;;  %v718_v27 = vld [vmem:[%s1096_s19 + $0x8] sm:$0xf0]  ;;  %p906_p12 = scmp.lt.s32.totalorder %s904_s10, %s900_s30 }
  0x2e   : > { %v621_v26 = vld [vmem:[%s1096_s19] sm:$0xf]  ;;  %v728_v28 = vld [vmem:[#allocation6 + $0x40] sm:$0xff]  ;;  %v717_v29 = vld [vmem:[%s1096_s19 + $0x4] sm:$0xf]  ;;  %p902_p2 = pnand %p901_p1, %p1074_p5 }
  0x2f   : > { %439 = vmatpush.bf16.msra.mxu0 %v725_v9  ;;  %v623_v30 = vld [vmem:[%s1096_s19 + $0xc] sm:$0xf0]  ;;  %v622_v31 = vor.u32 %v718_v27, %v621_v26  ;;  %v823_v37 = vld [vmem:[%s1156_s2] ss:$0 sm:$0xff]  ;;  %p907_p13 = por %p906_p12, %p905_p8 }
  0x30   : > { %469 = vmatpush.bf16.msra.mxu2 %v739_v8  ;;  %453 = vmatpush.bf16.msra.mxu1 %v733_v10  ;;  %v626_v32 = vor.u32 %v717_v29, %v623_v30  ;;  %p903_p4 = pneg %p902_p2 }
  0x32   : > { %p908_p0 = pnand %p907_p13, %p903_p4 }
  0x33   : > { %440 = vmatpush.bf16.msra.mxu0 %v724_v12 }
  0x34   : > { %470 = vmatpush.bf16.msra.mxu2 %v738_v11  ;;  %454 = vmatpush.bf16.msra.mxu1 %v732_v13 }
  0x37   : > { %441 = vmatpush.bf16.msra.mxu0 %v723_v15 }
  0x38   : > { %471 = vmatpush.bf16.msra.mxu2 %v737_v14  ;;  %455 = vmatpush.bf16.msra.mxu1 %v731_v16 }
  0x3b   : > { %442 = vmatpush.bf16.msra.mxu0 %v722_v18 }
  0x3c   : > { %472 = vmatpush.bf16.msra.mxu2 %v736_v17  ;;  %456 = vmatpush.bf16.msra.mxu1 %v730_v21 }
  0x3f   : > { %711 = vmatmul.msk.bf16.vlgmr.msra.gmra.mxu2 %vm429_vm1, %v630_v22  ;;  %443 = vmatpush.bf16.msra.mxu0 %v721_v23 }
  0x40   : > { %457 = vmatpush.bf16.msra.mxu1 %v729_v24 }
  0x43   : > { %444 = vmatpush.bf16.msra.mxu0 %v720_v25 }
  0x44   : > { %458 = vmatpush.bf16.msra.mxu1 %v728_v28 }
  0x46   : > { %445 = vmatmul.bf16.vlgmr.msra.gmra.mxu0 %v622_v31 }
  0x47   : > { %459 = vmatmul.bf16.vlgmr.msra.gmra.mxu1 %v626_v32 }
  0xc2   : > { %v474_v34 = vpop.f32.mrf.mxu2 }
  0xc3   : > { %v446_v33 = vpop.f32.mrf.mxu0 }
  0xc4   : > { %v460_v35 = vpop.f32.mrf.mxu1 }
  0xc5   : > { %v461_v36 = vadd.f32 %v460_v35, %v446_v33 }
  0xc7   : > { %v475_v38 = vadd.f32 %v474_v34, %v461_v36 }
  0xc9   : > { %v492_v39 = vadd.f32 %v823_v37, %v475_v38 }
  0xca   : > { %v476_v43 = vpop.f32.mrf.mxu2 }
  0xcb   : > { %494 = vst [vmem:[%s232_s26] sm:$0xff] %v492_v39  ;;  %v448_v40 = vpop.f32.mrf.mxu0 }
  0xcc   : > { %v462_v41 = vpop.f32.mrf.mxu1 }
  0xcd   : > { %v463_v42 = vadd.f32 %v462_v41, %v448_v40 }
  0xcf   : > { %v477_v44 = vadd.f32 %v476_v43, %v463_v42 }
  0xd1   : > { %v493_v45 = vadd.f32 %v823_v37, %v477_v44 }
  0xd3   : > { %495 = vst [vmem:[%s232_s26 + $0x8] sm:$0xff] %v493_v45 }
  0xd4   : > { %911 = shalt.err (!%p908_p0)
}
  0xd5   : > { %s977_s6 = smov 128   ;;  %s978_s22 = smov 8  }
  0xd6   : > { %750 = dma.vmem_to_hbm [thread:$0]  (%p1074_p5), %s510_s28, 256, %s512_s21, %s497_s15, %s977_s6, %s977_s6, %s978_s22  }
  0xd7 PF: > { %s526_s27 = sand.u32 1, %s950_s12   ;;  %p761_p3 = pnand %p612_p11, %p1048_p6 }
  0xd8   : > { %s527_s9 = scalar_lea.sflag [#allocation5], %s526_s27 }
  0xd9   : > { %p762_p7 = pneg %p761_p3 }
  0xdb   : > { %945 = dma.done.wait (%p762_p7), %s527_s9, 256  }
  0xdc   : > { %947 = vsyncadd (%p762_p7), %s527_s9, 4294967040  ;;  %s20_s17 = sadd.s32 1, %s970_s17   ;;  %s1164_s12 = smov %s954_s13 }
  0xdd   : > { %p17_p9 = scmp.ge.s32.totalorder %s20_s17, 4   ;;  %s1165_s13 = smov %s958_s14 }
  0xde   : > { %s1166_s14 = smov %s1083_s11  ;;  %s1167_s15 = smov %s966_s16 }
  0xdf   : > { %s1168_s16 = smov %s1170_s5  ;;  %19 = sbr.rel (!%p17_p9) target bundleno = 7 (0x7), region = 90 }
  0xe4   :  { %533 = vsyncpa [#allocation4], 1 }
  0xe5   :  { %535 = vsyncpa [#allocation4 + $0x1], 1 }
  0xe6   :  { %536 = vsyncpa [#allocation7], 1 }
  0xe7   :  { %537 = vsyncpa [#allocation5], 1 }
  0xe8   :  { %539 = vsyncpa [#allocation5 + $0x1], 1 }

</bundles_post_ra>
